<compile_context>
chip_gen: v5e
topology: v5e:2x2
jax: 0.10.0
libtpu: 0.0.40
codegen_flags: <defaults>
</compile_context>

<pallas_src>
import math

import jax
import jax.numpy as jnp
from jax import lax
from jax.experimental import pallas as pl
from jax.experimental.pallas import tpu as pltpu

DP = 128   # padded feature dim (lane-dense: multiple of 128)
HP = 128   # padded hidden dim  (hidden + the extra "ws" ones-column must fit)
VMEM_LIMIT = 48 * 1024 * 1024   # fits v7x (64 MiB) as well as v5e/v6e (128 MiB)


def _round_up(x, m):
    return (x + m - 1) // m * m


# ---------------------------------------------------------------------------
# Parameters
# ---------------------------------------------------------------------------
def _xavier_uniform(key, out_dim, in_dim, gain):
    bound = gain * math.sqrt(6.0 / (in_dim + out_dim))
    return jax.random.uniform(key, (out_dim, in_dim), jnp.float32, -bound, bound)


def init_sagenet_params(key, dim, n_layers):
    """Raw PyTorch-layout params: Q.weight [H,D], W.weight [D, D+H], zero bias."""
    gain = math.sqrt(2.0)  # nn.init.calculate_gain('relu')
    hidden = 2 * dim
    params = []
    for _ in range(n_layers):
        key, kq, kw = jax.random.split(key, 3)
        params.append({
            "Qw": _xavier_uniform(kq, hidden, dim, gain),        # [H, D]
            "Qb": jnp.zeros((hidden,), jnp.float32),
            "W": _xavier_uniform(kw, dim, dim + hidden, gain),   # [D, D+H]
            "Wb": jnp.zeros((dim,), jnp.float32),
        })
    return params


def pad_params(raw_params, dim):
    """Kernel-layout weights: transposed, zero-padded to lane-dense shapes,
    bf16 at the MXU inputs, biases kept in f32.  (Zero-padded rows contribute
    exactly zero, so no in-kernel slicing is needed; total padding cost is
    ~160 KB/layer, negligible vs. the A stream.)"""
    hidden = 2 * dim
    padded = []
    for p in raw_params:
        qw_t = jnp.zeros((DP, HP), jnp.bfloat16).at[:dim, :hidden].set(
            p["Qw"].T.astype(jnp.bfloat16))
        qb = jnp.zeros((1, HP), jnp.float32).at[0, :hidden].set(p["Qb"])
        # ws-column trick: n_src[:, hidden] = relu(0 + 1) = 1 for every source
        # row, so the aggregation matmul also produces rowsum(A) == ws.
        qb = qb.at[0, hidden].set(1.0)
        wn_t = jnp.zeros((HP, DP), jnp.bfloat16).at[:hidden, :dim].set(
            p["W"][:, :hidden].T.astype(jnp.bfloat16))           # n/ws part
        wh_t = jnp.zeros((DP, DP), jnp.bfloat16).at[:dim, :dim].set(
            p["W"][:, hidden:].T.astype(jnp.bfloat16))           # h_dst part
        wb = jnp.zeros((1, DP), jnp.float32).at[0, :dim].set(p["Wb"])
        padded.append({"Qw_t": qw_t, "Qb": qb, "Wn_t": wn_t,
                       "Wh_t": wh_t, "Wb": wb})
    return padded


# ---------------------------------------------------------------------------
# Kernel 1 (per layer): n_src = relu(Q h_src), staged once in bf16.
# ---------------------------------------------------------------------------
def _q_proj_kernel(h_ref, qw_ref, qb_ref, n_ref):
    h_bf = h_ref[...].astype(jnp.bfloat16)            # cast once per tile
    n = jnp.dot(h_bf, qw_ref[...],
                preferred_element_type=jnp.float32) + qb_ref[...]
    n_ref[...] = jnp.maximum(n, 0.0).astype(jnp.bfloat16)


def _q_project(h, qw_t, qb, tile):
    nsrc_p = h.shape[0]
    grid = (nsrc_p // tile,)
    flops = 2 * nsrc_p * DP * HP
    bytes_accessed = int(h.size) * 4 + int(qw_t.size) * 2 + int(qb.size) * 4 \
        + nsrc_p * HP * 2
    return pl.pallas_call(
        _q_proj_kernel,
        out_shape=jax.ShapeDtypeStruct((nsrc_p, HP), jnp.bfloat16),
        grid_spec=pltpu.PrefetchScalarGridSpec(
            num_scalar_prefetch=0,
            grid=grid,
            in_specs=[
                pl.BlockSpec((tile, DP), lambda i: (i, 0)),   # h_src row tile
                pl.BlockSpec((DP, HP), lambda i: (0, 0)),     # Qw (resident)
                pl.BlockSpec((1, HP), lambda i: (0, 0)),      # Qb (resident)
            ],
            out_specs=pl.BlockSpec((tile, HP), lambda i: (i, 0)),
        ),
        compiler_params=pltpu.CompilerParams(
            dimension_semantics=("parallel",),
            vmem_limit_bytes=VMEM_LIMIT),
        cost_estimate=pl.CostEstimate(flops=flops, transcendentals=0,
                                      bytes_accessed=bytes_accessed),
    )(h, qw_t, qb)


# ---------------------------------------------------------------------------
# Kernel 2 (per layer): tiled aggregation + W + L2 norm.
# grid = (dst_row_tiles, src_tiles); f32 accumulator scratch in VMEM.
# ---------------------------------------------------------------------------
def _make_agg_kernel(ws_col):
    def kernel(a_ref, n_ref, hdst_ref, wn_ref, wh_ref, wb_ref, out_ref, acc_ref):
        k = pl.program_id(1)

        @pl.when(k == 0)
        def _():
            acc_ref[...] = jnp.zeros_like(acc_ref)

        # agg[:, :H] = weighted neighbor sum; agg[:, ws_col] = rowsum(A) = ws.
        acc_ref[...] += jnp.dot(a_ref[...], n_ref[...],
                                preferred_element_type=jnp.float32)

        @pl.when(k == pl.num_programs(1) - 1)
        def _():
            agg = acc_ref[...]                               # f32 [tile, HP]
            ws = jnp.maximum(agg[:, ws_col:ws_col + 1], 1.0)
            inv_ws = pl.reciprocal(ws, approx=True)          # EUP slot, ~free

            # concat([agg/ws, h_dst]) @ W^T folded into two dots; the per-row
            # 1/ws scale commutes with the right matmul, so it is applied to
            # the smaller [tile, DP] product (VPU multiply, not a divide).
            z = (jnp.dot(agg.astype(jnp.bfloat16), wn_ref[...],
                         preferred_element_type=jnp.float32) * inv_ws
                 + jnp.dot(hdst_ref[...].astype(jnp.bfloat16), wh_ref[...],
                           preferred_element_type=jnp.float32)
                 + wb_ref[...])
            z = jnp.maximum(z, 0.0)                          # f32 [tile, DP]

            # Row-wise L2 normalization: rsqrt (EUP) + multiply (VPU).
            sumsq = jnp.sum(z * z, axis=1, keepdims=True)
            inv_norm = jnp.where(sumsq == 0.0, 1.0, lax.rsqrt(sumsq))
            out_ref[...] = z * inv_norm

    return kernel


def _sage_layer(h, a_pad, p, hidden, tile):
    """One WeightedSAGEConv layer: staged Q projection + tiled aggregation."""
    nsrc_p = h.shape[0]
    ndst_p = a_pad.shape[0]
    assert a_pad.shape[1] == nsrc_p and ndst_p <= nsrc_p

    # Hoisted Q matmul: n_src computed once per src row (not per dst tile).
    n_src = _q_project(h, p["Qw_t"], p["Qb"], tile)          # bf16 [Nsrc_p, HP]

    grid = (ndst_p // tile, nsrc_p // tile)
    flops = (2 * ndst_p * nsrc_p * HP          # aggregation (incl. ws column)
             + 2 * ndst_p * HP * DP            # Wn matmul
             + 2 * ndst_p * DP * DP)           # Wh matmul
    bytes_accessed = (int(a_pad.size) * 2 + int(n_src.size) * 2
                      + ndst_p * DP * 4                       # h_dst rows
                      + int(p["Wn_t"].size) * 2 + int(p["Wh_t"].size) * 2
                      + int(p["Wb"].size) * 4
                      + ndst_p * DP * 4)                      # output

    out = pl.pallas_call(
        _make_agg_kernel(hidden),
        out_shape=jax.ShapeDtypeStruct((ndst_p, DP), jnp.float32),
        grid_spec=pltpu.PrefetchScalarGridSpec(
            num_scalar_prefetch=0,
            grid=grid,
            in_specs=[
                pl.BlockSpec((tile, tile), lambda i, k: (i, k)),  # A tile
                pl.BlockSpec((tile, HP), lambda i, k: (k, 0)),    # n_src tile
                pl.BlockSpec((tile, DP), lambda i, k: (i, 0)),    # h_dst tile
                pl.BlockSpec((HP, DP), lambda i, k: (0, 0)),      # Wn (resident)
                pl.BlockSpec((DP, DP), lambda i, k: (0, 0)),      # Wh (resident)
                pl.BlockSpec((1, DP), lambda i, k: (0, 0)),       # Wb (resident)
            ],
            out_specs=pl.BlockSpec((tile, DP), lambda i, k: (i, 0)),
            scratch_shapes=[pltpu.VMEM((tile, HP), jnp.float32)],  # agg accum
        ),
        compiler_params=pltpu.CompilerParams(
            dimension_semantics=("parallel", "arbitrary"),
            vmem_limit_bytes=VMEM_LIMIT),
        cost_estimate=pl.CostEstimate(flops=flops,
                                      transcendentals=2 * ndst_p,
                                      bytes_accessed=bytes_accessed),
    )(a_pad, n_src, h, p["Wn_t"], p["Wh_t"], p["Wb"])
    return out


def sagenet_forward(padded_params, adjs, h0, dim, hidden, tile=256):
    """Full SAGENet forward.  `tile` should be 256+ on v6e/v7x for production
    graphs (MXU occupancy); any multiple of 128 works on all generations."""
    n_layers = len(adjs)
    counts = [h0.shape[0]] + [a.shape[0] for a in adjs]
    counts_p = [_round_up(c, tile) for c in counts]

    h = jnp.zeros((counts_p[0], DP), jnp.float32).at[:counts[0], :dim].set(h0)
    for l in range(n_layers):
        a = adjs[l]
        ndst, nsrc = a.shape
        assert nsrc == counts[l] and ndst == counts[l + 1] and ndst <= nsrc
        a_pad = jnp.zeros((counts_p[l + 1], counts_p[l]), jnp.bfloat16
                          ).at[:ndst, :nsrc].set(a.astype(jnp.bfloat16))
        # NOTE: h_dst = leading rows of h (DGL block convention).
        h = _sage_layer(h, a_pad, padded_params[l], hidden, tile)
    return h[:counts[-1], :dim]


# ---------------------------------------------------------------------------
# Pure-JAX f32 reference of the PyTorch forward (eval mode).
# ---------------------------------------------------------------------------
def sagenet_reference(raw_params, adjs, h):
    for p, a in zip(raw_params, adjs):
        ndst = a.shape[0]
        h_dst = h[:ndst]
        n_src = jax.nn.relu(h @ p["Qw"].T + p["Qb"])
        agg = a @ n_src
        ws = jnp.maximum(jnp.sum(a, axis=1, keepdims=True), 1.0)
        cat = jnp.concatenate([agg / ws, h_dst], axis=1)
        z = jax.nn.relu(cat @ p["W"].T + p["Wb"])
        zn = jnp.sqrt(jnp.sum(z * z, axis=1, keepdims=True))
        zn = jnp.where(zn == 0.0, 1.0, zn)
        h = z / zn
    return h


if __name__ == "__main__":
    key = jax.random.PRNGKey(0)

    # hidden_dims_dict = {'a': 16, 'b': 16} -> D = 32, hidden = 64, n_layers = 2
    D = 32
    hidden = 2 * D
    n_layers = 2
    # Node counts per level (src of layer 0, then dst counts per block); sized
    # so the (dst, src) grid has multiple tiles: layer0 grid (2,3), layer1 (1,2).
    node_counts = [384, 192, 96]
    tile = 128   # demo tile; use 256+ on v6e/v7x production graphs

    key, kp, kh = jax.random.split(key, 3)
    raw_params = init_sagenet_params(kp, D, n_layers)
    padded_params = pad_params(raw_params, D)
    h0 = jax.random.normal(kh, (node_counts[0], D), jnp.float32)

    # Dense weighted adjacency per block (non-negative weights, ~50% sparsity).
    adjs = []
    for l in range(n_layers):
        key, kw_, km_ = jax.random.split(key, 3)
        n_dst, n_src = node_counts[l + 1], node_counts[l]
        w = jax.random.uniform(kw_, (n_dst, n_src), jnp.float32, 0.1, 1.0)
        mask = (jax.random.uniform(km_, (n_dst, n_src)) > 0.5).astype(jnp.float32)
        adjs.append(w * mask)

    out = sagenet_forward(padded_params, adjs, h0, D, hidden, tile=tile)
    out = jax.block_until_ready(out)

    ref = sagenet_reference(raw_params, adjs, h0)
    assert out.shape == (node_counts[-1], D)
    assert bool(jnp.all(jnp.isfinite(out)))
    max_err = float(jnp.max(jnp.abs(out - ref)))
    assert bool(jnp.allclose(out, ref, rtol=8e-2, atol=8e-2)), max_err
    print("KERNEL_OK")
</pallas_src>

<mosaic_0001>
module attributes {stable_mosaic.version = 11 : i64} {
  func.func @_q_proj_kernel(%arg0: i32, %arg1: memref<128x128xf32, #tpu.memory_space<vmem>>, %arg2: memref<128x128xbf16, #tpu.memory_space<vmem>>, %arg3: memref<1x128xf32, #tpu.memory_space<vmem>>, %arg4: memref<128x128xbf16, #tpu.memory_space<vmem>>) attributes {dimension_semantics = [#tpu.dimension_semantics<parallel>], iteration_bounds = array<i64: 3>, scalar_prefetch = 0 : i64, scratch_operands = 0 : i64, tpu.core_type = #tpu.core_type<tc>, window_params = [{transform_indices = @transform_0, window_bounds = array<i64: 128, 128>}, {pipeline_mode = #tpu.pipeline_mode<synchronous>, transform_indices = @transform_1, window_bounds = array<i64: 128, 128>}, {pipeline_mode = #tpu.pipeline_mode<synchronous>, transform_indices = @transform_2, window_bounds = array<i64: 1, 128>}, {transform_indices = @transform_3, window_bounds = array<i64: 128, 128>}]} {
    %c0 = arith.constant 0 : index
    %c0_0 = arith.constant 0 : index
    %0 = vector.load %arg1[%c0, %c0_0] : memref<128x128xf32, #tpu.memory_space<vmem>>, vector<128x128xf32>
    %1 = arith.truncf %0 : vector<128x128xf32> to vector<128x128xbf16>
    %c0_1 = arith.constant 0 : index
    %c0_2 = arith.constant 0 : index
    %2 = vector.load %arg2[%c0_1, %c0_2] : memref<128x128xbf16, #tpu.memory_space<vmem>>, vector<128x128xbf16>
    %cst = arith.constant dense<0.000000e+00> : vector<128x128xf32>
    %3 = tpu.matmul %1, %2, %cst {dimension_numbers = #tpu.dot_dimension_numbers<[1], [0], [0], [1], [0, 0, 1, 1], [], []>} : vector<128x128xbf16>, vector<128x128xbf16>, vector<128x128xf32> -> vector<128x128xf32>
    %c0_3 = arith.constant 0 : index
    %c0_4 = arith.constant 0 : index
    %4 = vector.load %arg3[%c0_3, %c0_4] : memref<1x128xf32, #tpu.memory_space<vmem>>, vector<1x128xf32>
    %5 = vector.broadcast %4 : vector<1x128xf32> to vector<128x128xf32>
    %6 = arith.addf %3, %5 : vector<128x128xf32>
    %cst_5 = arith.constant 0.000000e+00 : f32
    %7 = vector.broadcast %cst_5 : f32 to vector<128x128xf32>
    %8 = arith.maximumf %6, %7 : vector<128x128xf32>
    %9 = arith.truncf %8 : vector<128x128xf32> to vector<128x128xbf16>
    %c0_6 = arith.constant 0 : index
    %c0_7 = arith.constant 0 : index
    %10 = vector.load %arg4[%c0_6, %c0_7] : memref<128x128xbf16, #tpu.memory_space<vmem>>, vector<128x128xbf16>
    tpu.vector_store %arg4[%c0_6, %c0_7], %9 {strides = array<i32>} : memref<128x128xbf16, #tpu.memory_space<vmem>>, vector<128x128xbf16>,
    return
  }
  func.func @transform_0(%arg0: i32) -> (i32, i32) {
    %c0_i32 = arith.constant 0 : i32
    %c0_i32_0 = arith.constant 0 : i32
    return %arg0, %c0_i32 : i32, i32
  }
  func.func @transform_1(%arg0: i32) -> (i32, i32) {
    %c0_i32 = arith.constant 0 : i32
    %c0_i32_0 = arith.constant 0 : i32
    %c0_i32_1 = arith.constant 0 : i32
    return %c0_i32, %c0_i32_0 : i32, i32
  }
  func.func @transform_2(%arg0: i32) -> (i32, i32) {
    %c0_i32 = arith.constant 0 : i32
    %c0_i32_0 = arith.constant 0 : i32
    %c0_i32_1 = arith.constant 0 : i32
    return %c0_i32, %c0_i32_0 : i32, i32
  }
  func.func @transform_3(%arg0: i32) -> (i32, i32) {
    %c0_i32 = arith.constant 0 : i32
    %c0_i32_0 = arith.constant 0 : i32
    return %arg0, %c0_i32 : i32, i32
  }
}

</mosaic_0001>

<bundles_post_ra>
// kernel: tpu_custom_call.1
= control target key start
LH: loop header
LB: loop body
LE: loop exit
PB: predicated region body
PF: predicated region fallthrough
CT: control target
= control target key end

     0   :  { %8 = vsyncpa [#allocation3], 0  ;;  %s1021_s0 = inlined_call_operand.hbm [shape: f32[384,128], index: 0, kind: input, shape index: {}]   ;;  %s1022_s1 = inlined_call_operand.hbm [shape: bf16[128,128], index: 1, kind: input, shape index: {}]   ;;  %s1023_s2 = inlined_call_operand.vmem [shape: f32[1,128], index: 2, kind: input, shape index: {}]   ;;  %s1024_s3 = inlined_call_operand.hbm [shape: bf16[384,128], index: 3, kind: output, shape index: {}]  }
   0x1   :  { %10 = vsyncpa [#allocation3 + $0x1], 0 }
   0x2   :  { %11 = vsyncpa [#allocation6], 0 }
   0x3   :  { %12 = vsyncpa [#allocation4], 0 }
   0x4   :  { %14 = vsyncpa [#allocation4 + $0x1], 0  ;;  %s850_s12 = smov 0   ;;  %s852_s13 = smov 0  }
   0x5   :  { %s854_s14 = smov 0   ;;  %s856_s15 = smov 0  }
   0x6 LB: > { %s871_s16 = sadd.s32 4294967295, %s821_s15   ;;  %s498_s17 = sadd.s32 4294967294, %s821_s15   ;;  %s821_s15 = sphi %s856_s15, %s1033_s15   ;;  %s817_s14 = sphi %s854_s14, %s1032_s14   ;;  %s813_s13 = sphi %s852_s13, %s1031_s13   ;;  %s809_s12 = sphi %s850_s12, %s1030_s12  }
   0x7   : > { %p40_p0 = scmp.ne.s32.totalorder %s813_s13, %s809_s12  ;;  %p41_p1 = scmp.eq.s32.totalorder %s871_s16, 0 }
   0x8   : > { %p106_p2 = scmp.eq.s32.totalorder %s871_s16, 2  ;;  %p112_p3 = scmp.eq.s32.totalorder %s498_s17, 2 }
   0x9   : > { %p880_p4 = por %p41_p1, %p40_p0  ;;  %p499_p5 = scmp.ge.s32.totalorder %s821_s15, 1 }
   0xa   : > { %p885_p6 = por %p112_p3, %p40_p0  ;;  %p119_p7 = scmp.lt.s32.totalorder %s821_s15, 4 }
   0xb   : > { %s130_s22 = sshll.u32 %s1022_s1, 4  ;;  %s823_s24 = smov [#allocation5]   ;;  %s131_s22 = int_to_ptr.hbm [resolvable:$true] %s130_s22 }
   0xc   : > { %p893_p8 = pnand %p499_p5, %p119_p7  ;;  %s132_s25 = sshll.u32 %s823_s24, 4  ;;  %s133_s25 = int_to_ptr.vmem [resolvable:$true] %s132_s25 }
   0xd   : > { %s902_s26 = sadd.s32 1, %s821_s15   ;;  %s824_s27 = smov 64  }
   0xe   : > { %p635_p9 = pneg %p893_p8  ;;  %s825_s28 = smov 4  }
   0xf   : > { %s24_s29 = ssub.s32 %s821_s15, %s902_s26  ;;  %s27_s30 = sadd.s32 1, %s817_s14 }
  0x10   : > { %p636_p10 = pnand %p635_p9, %p41_p1  ;;  %p25_p11 = scmp.eq.s32.totalorder %s24_s29, 0 }
  0x11   : > { %p34_p12 = scmp.ne.s32.totalorder %s817_s14, %s813_s13  ;;  %p35_p13 = scmp.eq.s32.totalorder %s821_s15, 0 }
  0x12   : > { %638 = dma.hbm_to_vmem [thread:$0]  (!%p636_p10), %s131_s22, 1024, %s133_s25, [#allocation6], %s824_s27, %s824_s27, %s825_s28  }
  0x13   : > { %p648_p0 = scmp.lt.s32.totalorder %s821_s15, 3  ;;  %p36_p3 = por %p35_p13, %p34_p12 }
  0x14   : > { %s912_s4 = scalar_select %p25_p11, %s817_s14, %s27_s30  }
  0x15   : > { %p916_p5 = por %p106_p2, %p34_p12  ;;  %s149_s6 = sand.u32 1, %s817_s14  }
  0x16   : > { %s546_s7 = sshll.u32 %s821_s15, 7  ;;  %s502_s8 = sshll.u32 %s149_s6, 7 }
  0x17   : > { %s158_s11 = scalar_lea.hbm %s1021_s0, %s546_s7  ;;  %s153_s20 = scalar_lea.vmem [#allocation2], %s502_s8 }
  0x18   : > { %s159_s17 = sshll.u32 %s158_s11, 4  ;;  %s161_s21 = sshll.u32 %s153_s20, 4  ;;  %s160_s17 = int_to_ptr.hbm [resolvable:$true] %s159_s17  ;;  %s162_s21 = int_to_ptr.vmem [resolvable:$true] %s161_s21 }
  0x19   : > { %p927_p7 = pnand %p648_p0, %p36_p3  ;;  %s150_s24 = scalar_lea.sflag [#allocation3], %s149_s6 }
  0x1a   : > { %s721_s25 = sshra.s32 %s160_s17, 4  ;;  %s728_s30 = scalar_lea.hbm %s1021_s0, 384  ;;  %s722_s25 = int_to_ptr.hbm [resolvable:$true] %s721_s25 }
  0x1b   : > { %s723_s27 = scalar_lea.hbm %s722_s25, 128  ;;  %p725_p9 = pneg %p927_p7 }
  0x1c   : > { %p724_p2 = scmp.ne.s32.totalorder %s722_s25, %s723_s27  ;;  %p729_p12 = scmp.lt.s32.totalorder %s722_s25, %s1021_s0 }
  0x1d   : > { %p730_p13 = scmp.lt.s32.totalorder %s728_s30, %s723_s27 }
  0x1e   : > { %p726_p10 = pnand %p725_p9, %p724_p2 }
  0x1f   : > { %p731_p0 = por %p730_p13, %p729_p12 }
  0x20   : > { %p727_p11 = pneg %p726_p10 }
  0x22   : > { %p732_p3 = pnand %p731_p0, %p727_p11 }
  0x24   : > { %735 = shalt.err (!%p732_p3)
}
  0x25   : > { %s826_s6 = smov 128   ;;  %s827_s9 = smov 8  }
  0x26   : > { %642 = dma.hbm_to_vmem [thread:$0]  (!%p927_p7), %s160_s17, 2048, %s162_s21, %s150_s24, %s826_s6, %s826_s6, %s827_s9  }
  0x27   : > { %173 = sbr.rel (%p893_p8) target bundleno = 247 (0xf7), region = 32  ;;  %s944_s10 = sand.u32 (!%p893_p8), 1, %s813_s13  }
  0x28   : > { %s506_s11 = sshll.u32 (!%p893_p8), %s944_s10, 7  ;;  %s176_s20 = scalar_lea.sflag (!%p893_p8), [#allocation3], %s944_s10 }
  0x29   : > { %s948_s25 = scalar_lea.vmem (!%p893_p8), [#allocation2], %s506_s11 }
  0x2c   : > { %796 = dma.done.wait (%p880_p4), %s176_s20, 2048  }
  0x2d   : > { %798 = vsyncadd (%p880_p4), %s176_s20, 4294965248 }
  0x2e   : > { %800 = dma.done.wait (%p41_p1), [#allocation6], 1024  }
  0x2f   : > { %802 = vsyncadd (%p41_p1), [#allocation6], 4294966272  ;;  %v554_v0 = vld [vmem:[#allocation5 + $0x38] sm:$0xff]  ;;  %v553_v1 = vld [vmem:[#allocation5 + $0x30] sm:$0xff]  ;;  %s508_s17 = sshll.u32 %s944_s10, 6  ;;  %s555_s22 = sshll.u32 %s871_s16, 6 }
  0x30   : > { %302 = vmatpush.bf16.msra.mxu0 %v554_v0  ;;  %603 = vmatpush.bf16.msra.mxu1 %v554_v0  ;;  %v552_v2 = vld [vmem:[#allocation5 + $0x28] sm:$0xff]  ;;  %v551_v3 = vld [vmem:[#allocation5 + $0x20] sm:$0xff]  ;;  %v550_v4 = vld [vmem:[#allocation5 + $0x18] sm:$0xff]  ;;  %s978_s21 = scalar_lea.vmem [#allocation7], %s508_s17  ;;  %s411_s28 = scalar_lea.hbm %s1024_s3, %s555_s22 }
  0x31   : > { %604 = vmatpush.bf16.msra.mxu2 %v554_v0  ;;  %605 = vmatpush.bf16.msra.mxu3 %v554_v0  ;;  %v549_v5 = vld [vmem:[#allocation5 + $0x10] sm:$0xff]  ;;  %v548_v6 = vld [vmem:[#allocation5 + $0x8] sm:$0xff]  ;;  %v547_v7 = vld [vmem:[#allocation5] sm:$0xff]  ;;  %s412_s29 = sshll.u32 %s978_s21, 4  ;;  %s414_s30 = sshll.u32 %s411_s28, 4  ;;  %s413_s29 = int_to_ptr.vmem [resolvable:$true] %s412_s29  ;;  %s415_s30 = int_to_ptr.hbm [resolvable:$true] %s414_s30 }
  0x32   : > { %v210_v8 = vld [vmem:[%s948_s25] sm:$0xff]  ;;  %v211_v9 = vld [vmem:[%s948_s25 + $0x8] sm:$0xff]  ;;  %v212_v20 = vld [vmem:[%s948_s25 + $0x10] sm:$0xff]  ;;  %s400_s16 = scalar_lea.sflag [#allocation4], %s944_s10  ;;  %s765_s7 = sshra.s32 %s415_s30, 4  ;;  %s766_s7 = int_to_ptr.hbm [resolvable:$true] %s765_s7 }
  0x33   : > { %v214_v10 = vld [vmem:[%s948_s25 + $0x20] sm:$0xff]  ;;  %v215_v11 = vld [vmem:[%s948_s25 + $0x28] sm:$0xff]  ;;  %v226_v16 = vpack.c.bf16 %v211_v9, %v210_v8  ;;  %v213_v21 = vld [vmem:[%s948_s25 + $0x18] sm:$0xff]  ;;  %s767_s8 = scalar_lea.hbm %s766_s7, 64  ;;  %s771_s11 = scalar_lea.hbm %s1024_s3, 192 }
  0x34   : > { %303 = vmatpush.bf16.msra.mxu0 %v553_v1  ;;  %606 = vmatpush.bf16.msra.mxu1 %v553_v1  ;;  %v218_v12 = vld [vmem:[%s948_s25 + $0x40] sm:$0xff]  ;;  %v219_v13 = vld [vmem:[%s948_s25 + $0x48] sm:$0xff]  ;;  %v228_v17 = vpack.c.bf16 %v215_v11, %v214_v10  ;;  %v216_v22 = vld [vmem:[%s948_s25 + $0x30] sm:$0xff]  ;;  %v227_v28 = vpack.c.bf16 %v213_v21, %v212_v20  ;;  %p768_p1 = scmp.ne.s32.totalorder %s766_s7, %s767_s8  ;;  %p772_p7 = scmp.lt.s32.totalorder %s766_s7, %s1024_s3 }
  0x35   : > { %607 = vmatpush.bf16.msra.mxu2 %v553_v1  ;;  %608 = vmatpush.bf16.msra.mxu3 %v553_v1  ;;  %v222_v14 = vld [vmem:[%s948_s25 + $0x60] sm:$0xff]  ;;  %v223_v15 = vld [vmem:[%s948_s25 + $0x68] sm:$0xff]  ;;  %v230_v18 = vpack.c.bf16 %v219_v13, %v218_v12  ;;  %v217_v23 = vld [vmem:[%s948_s25 + $0x38] sm:$0xff]  ;;  %p773_p2 = scmp.lt.s32.totalorder %s771_s11, %s767_s8 }
  0x36   : > { %v232_v19 = vpack.c.bf16 %v223_v15, %v222_v14  ;;  %v220_v24 = vld [vmem:[%s948_s25 + $0x50] sm:$0xff]  ;;  %v221_v25 = vld [vmem:[%s948_s25 + $0x58] sm:$0xff]  ;;  %v229_v29 = vpack.c.bf16 %v217_v23, %v216_v22  ;;  %v690_v34 = vld [vmem:[%s1023_s2] ss:$0 sm:$0xff]  ;;  %p769_p4 = pnand %p768_p1, %p916_p5 }
  0x37   : > { %v224_v26 = vld [vmem:[%s948_s25 + $0x70] sm:$0xff]  ;;  %v225_v27 = vld [vmem:[%s948_s25 + $0x78] sm:$0xff]  ;;  %v231_v30 = vpack.c.bf16 %v221_v25, %v220_v24  ;;  %p774_p9 = por %p773_p2, %p772_p7 }
  0x38   : > { %304 = vmatpush.bf16.msra.mxu0 %v552_v2  ;;  %609 = vmatpush.bf16.msra.mxu1 %v552_v2  ;;  %v233_v31 = vpack.c.bf16 %v225_v27, %v224_v26  ;;  %p770_p8 = pneg %p769_p4 }
  0x39   : > { %610 = vmatpush.bf16.msra.mxu2 %v552_v2  ;;  %611 = vmatpush.bf16.msra.mxu3 %v552_v2 }
  0x3a   : > { %p775_p10 = pnand %p774_p9, %p770_p8 }
  0x3c   : > { %305 = vmatpush.bf16.msra.mxu0 %v551_v3  ;;  %612 = vmatpush.bf16.msra.mxu1 %v551_v3 }
  0x3d   : > { %613 = vmatpush.bf16.msra.mxu2 %v551_v3  ;;  %614 = vmatpush.bf16.msra.mxu3 %v551_v3 }
  0x40   : > { %306 = vmatpush.bf16.msra.mxu0 %v550_v4  ;;  %615 = vmatpush.bf16.msra.mxu1 %v550_v4 }
  0x41   : > { %616 = vmatpush.bf16.msra.mxu2 %v550_v4  ;;  %617 = vmatpush.bf16.msra.mxu3 %v550_v4 }
  0x44   : > { %307 = vmatpush.bf16.msra.mxu0 %v549_v5  ;;  %618 = vmatpush.bf16.msra.mxu1 %v549_v5 }
  0x45   : > { %619 = vmatpush.bf16.msra.mxu2 %v549_v5  ;;  %620 = vmatpush.bf16.msra.mxu3 %v549_v5 }
  0x48   : > { %308 = vmatpush.bf16.msra.mxu0 %v548_v6  ;;  %621 = vmatpush.bf16.msra.mxu1 %v548_v6 }
  0x49   : > { %622 = vmatpush.bf16.msra.mxu2 %v548_v6  ;;  %623 = vmatpush.bf16.msra.mxu3 %v548_v6 }
  0x4c   : > { %309 = vmatpush.bf16.msra.mxu0 %v547_v7  ;;  %624 = vmatpush.bf16.msra.mxu1 %v547_v7 }
  0x4d   : > { %625 = vmatpush.bf16.msra.mxu2 %v547_v7  ;;  %626 = vmatpush.bf16.msra.mxu3 %v547_v7 }
  0x4f   : > { %310 = vmatmul.bf16.vlgmr.msra.gmra.mxu0 %v226_v16  ;;  %320 = vmatmul.bf16.vlgmr.msra.gmra.mxu1 %v228_v17 }
  0x50   : > { %330 = vmatmul.bf16.vlgmr.msra.gmra.mxu2 %v230_v18  ;;  %340 = vmatmul.bf16.vlgmr.msra.gmra.mxu3 %v232_v19 }
  0x5f   : > { %315 = vmatmul.bf16.gmra.mxu0 %v227_v28  ;;  %325 = vmatmul.bf16.gmra.mxu1 %v229_v29 }
  0x60   : > { %335 = vmatmul.bf16.gmra.mxu2 %v231_v30  ;;  %345 = vmatmul.bf16.gmra.mxu3 %v233_v31 }
  0xcc   : > { %v311_v32 = vpop.f32.mrf.mxu0  ;;  %v321_v33 = vpop.f32.mrf.mxu1 }
  0xcd   : > { %v312_v35 = vadd.f32 %v690_v34, %v311_v32  ;;  %v322_v36 = vadd.f32 %v690_v34, %v321_v33 }
  0xcf   : > { %v351_v43 = vmax.f32 %v312_v35, 0.0  ;;  %v355_v44 = vmax.f32 %v322_v36, 0.0 }
  0xd3   : > { %v331_v37 = vpop.f32.mrf.mxu2  ;;  %v341_v38 = vpop.f32.mrf.mxu3 }
  0xd4   : > { %v313_v39 = vpop.f32.mrf.mxu0  ;;  %v323_v40 = vpop.f32.mrf.mxu1  ;;  %v332_v49 = vadd.f32 %v690_v34, %v331_v37  ;;  %v342_v50 = vadd.f32 %v690_v34, %v341_v38 }
  0xd5   : > { %v314_v41 = vadd.f32 %v690_v34, %v313_v39  ;;  %v324_v42 = vadd.f32 %v690_v34, %v323_v40 }
  0xd6   : > { %v359_v57 = vmax.f32 %v332_v49, 0.0  ;;  %v363_v58 = vmax.f32 %v342_v50, 0.0 }
  0xd7   : > { %v352_v45 = vmax.f32 %v314_v41, 0.0  ;;  %v356_v46 = vmax.f32 %v324_v42, 0.0 }
  0xd9   : > { %v559_v47 = vpack.c.bf16 %v352_v45, %v351_v43  ;;  %v569_v48 = vpack.c.bf16 %v356_v46, %v355_v44 }
  0xdb   : > { %560 = vst [vmem:[%s978_s21] sm:$0xff] %v559_v47   ;;  %v333_v51 = vpop.f32.mrf.mxu2  ;;  %v343_v52 = vpop.f32.mrf.mxu3 }
  0xdc   : > { %597 = vst [vmem:[%s978_s21 + $0x10] sm:$0xff] %v569_v48   ;;  %v334_v53 = vadd.f32 %v690_v34, %v333_v51  ;;  %v344_v54 = vadd.f32 %v690_v34, %v343_v52  ;;  %v316_v55 = vpop.f32.mrf.mxu0  ;;  %v326_v56 = vpop.f32.mrf.mxu1 }
  0xdd   : > { %v317_v63 = vadd.f32 %v690_v34, %v316_v55  ;;  %v327_v0 = vadd.f32 %v690_v34, %v326_v56 }
  0xde   : > { %v360_v59 = vmax.f32 %v334_v53, 0.0  ;;  %v364_v60 = vmax.f32 %v344_v54, 0.0 }
  0xdf   : > { %v353_v7 = vmax.f32 %v317_v63, 0.0  ;;  %v357_v8 = vmax.f32 %v327_v0, 0.0 }
  0xe0   : > { %v579_v61 = vpack.c.bf16 %v360_v59, %v359_v57  ;;  %v589_v62 = vpack.c.bf16 %v364_v60, %v363_v58 }
  0xe2   : > { %599 = vst [vmem:[%s978_s21 + $0x20] sm:$0xff] %v579_v61  }
  0xe3   : > { %601 = vst [vmem:[%s978_s21 + $0x30] sm:$0xff] %v589_v62   ;;  %v336_v1 = vpop.f32.mrf.mxu2  ;;  %v346_v2 = vpop.f32.mrf.mxu3 }
  0xe4   : > { %v318_v3 = vpop.f32.mrf.mxu0  ;;  %v328_v4 = vpop.f32.mrf.mxu1  ;;  %v337_v13 = vadd.f32 %v690_v34, %v336_v1  ;;  %v347_v14 = vadd.f32 %v690_v34, %v346_v2 }
  0xe5   : > { %v319_v5 = vadd.f32 %v690_v34, %v318_v3  ;;  %v329_v6 = vadd.f32 %v690_v34, %v328_v4 }
  0xe6   : > { %v361_v19 = vmax.f32 %v337_v13, 0.0  ;;  %v365_v20 = vmax.f32 %v347_v14, 0.0 }
  0xe7   : > { %v354_v9 = vmax.f32 %v319_v5, 0.0  ;;  %v358_v10 = vmax.f32 %v329_v6, 0.0 }
  0xe9   : > { %v564_v11 = vpack.c.bf16 %v354_v9, %v353_v7  ;;  %v574_v12 = vpack.c.bf16 %v358_v10, %v357_v8 }
  0xeb   : > { %596 = vst [vmem:[%s978_s21 + $0x8] sm:$0xff] %v564_v11   ;;  %v338_v15 = vpop.f32.mrf.mxu2  ;;  %v348_v16 = vpop.f32.mrf.mxu3 }
  0xec   : > { %598 = vst [vmem:[%s978_s21 + $0x18] sm:$0xff] %v574_v12   ;;  %v339_v17 = vadd.f32 %v690_v34, %v338_v15  ;;  %v349_v18 = vadd.f32 %v690_v34, %v348_v16 }
  0xee   : > { %v362_v21 = vmax.f32 %v339_v17, 0.0  ;;  %v366_v22 = vmax.f32 %v349_v18, 0.0 }
  0xf0   : > { %v584_v23 = vpack.c.bf16 %v362_v21, %v361_v19  ;;  %v594_v24 = vpack.c.bf16 %v366_v22, %v365_v20 }
  0xf2   : > { %600 = vst [vmem:[%s978_s21 + $0x28] sm:$0xff] %v584_v23  }
  0xf3   : > { %602 = vst [vmem:[%s978_s21 + $0x38] sm:$0xff] %v594_v24  }
  0xf4   : > { %778 = shalt.err (!%p775_p10)
}
  0xf5   : > { %s828_s10 = smov 64   ;;  %s829_s18 = smov 4  }
  0xf6   : > { %633 = dma.vmem_to_hbm [thread:$0]  (%p916_p5), %s413_s29, 1024, %s415_s30, %s400_s16, %s828_s10, %s828_s10, %s829_s18  }
  0xf7 PF: > { %p650_p11 = scmp.ge.s32.totalorder %s821_s15, 2  ;;  %s429_s23 = sand.u32 1, %s809_s12  }
  0xf8   : > { %s430_s17 = scalar_lea.sflag [#allocation4], %s429_s23 }
  0xf9   : > { %p644_p12 = pnand %p650_p11, %p885_p6 }
  0xfb   : > { %p645_p13 = pneg %p644_p12 }
  0xfd   : > { %804 = dma.done.wait (%p645_p13), %s430_s17, 1024  }
  0xfe   : > { %806 = vsyncadd (%p645_p13), %s430_s17, 4294966272  ;;  %p17_p0 = scmp.ge.s32.totalorder %s902_s26, 5   ;;  %s1030_s12 = smov %s813_s13 }
  0xff   : > { %s1031_s13 = smov %s817_s14  ;;  %s1032_s14 = smov %s912_s4 }
 0x100   : > { %s1033_s15 = smov %s902_s26  ;;  %19 = sbr.rel (!%p17_p0) target bundleno = 6 (0x6), region = 81 }
 0x105   :  { %436 = vsyncpa [#allocation3], 1 }
 0x106   :  { %438 = vsyncpa [#allocation3 + $0x1], 1 }
 0x107   :  { %439 = vsyncpa [#allocation6], 1 }
 0x108   :  { %440 = vsyncpa [#allocation4], 1 }
 0x109   :  { %442 = vsyncpa [#allocation4 + $0x1], 1 }

</bundles_post_ra>
